<compile_context>
chip_gen: v7x
topology: tpu7x:2x2x1
jax: 0.10.0
libtpu: 0.0.40
codegen_flags: <defaults>
</compile_context>

<pallas_src>
import math
import jax
import jax.numpy as jnp
from jax.experimental import pallas as pl
from jax.experimental.pallas import tpu as pltpu


def _round_up(v, m):
    return ((v + m - 1) // m) * m


def _cdiv(a, b):
    return (a + b - 1) // b


def _floor_mult(v, m):
    return max(m, (v // m) * m)


# ----------------------------- kernels --------------------------------------

def _linear_bias_single_kernel(x_ref, w_ref, b_ref, o_ref):
    # Whole (padded) K in one tile: no scratch, no K grid axis.
    acc = jnp.dot(x_ref[...], w_ref[...], preferred_element_type=jnp.float32)
    o_ref[...] = (acc + b_ref[...].astype(jnp.float32)).astype(o_ref.dtype)


def _linear_nobias_single_kernel(x_ref, w_ref, o_ref):
    acc = jnp.dot(x_ref[...], w_ref[...], preferred_element_type=jnp.float32)
    o_ref[...] = acc.astype(o_ref.dtype)


def _linear_bias_kernel(x_ref, w_ref, b_ref, o_ref, acc_ref):
    k = pl.program_id(3)
    prod = jnp.dot(x_ref[...], w_ref[...], preferred_element_type=jnp.float32)

    @pl.when(k == 0)
    def _():
        acc_ref[...] = prod                       # direct store, no zero+add

    @pl.when(k > 0)
    def _():
        acc_ref[...] += prod

    @pl.when(k == pl.num_programs(3) - 1)
    def _():
        o_ref[...] = (acc_ref[...] + b_ref[...].astype(jnp.float32)).astype(o_ref.dtype)


def _linear_nobias_kernel(x_ref, w_ref, o_ref, acc_ref):
    k = pl.program_id(3)
    prod = jnp.dot(x_ref[...], w_ref[...], preferred_element_type=jnp.float32)

    @pl.when(k == 0)
    def _():
        acc_ref[...] = prod

    @pl.when(k > 0)
    def _():
        acc_ref[...] += prod

    @pl.when(k == pl.num_programs(3) - 1)
    def _():
        o_ref[...] = acc_ref[...].astype(o_ref.dtype)


# ----------------------------- tiling ---------------------------------------

def _select_tiles(M, K, N, cdtype, out_dtype, tm, tn, tk, B, vmem_limit_bytes):
    """Pick lane/sublane-legal tiles that fit the VMEM budget."""
    sub = max(8, 32 // jnp.dtype(cdtype).itemsize)   # 8 f32 / 16 bf16 / 32 int8
    Ka = _round_up(K, 128)
    Na = _round_up(N, 128)
    Ma = _round_up(M, sub)

    if tk is None:
        tk = 1024
    if tn is None:
        tn = 1024
    if tm is None:
        # Full-M tiles stream every weight tile from HBM exactly once; for
        # typical hfta "model-array" shapes (small per-model M, large K,N)
        # weights dominate HBM traffic.
        tm = Ma if Ma <= 1024 else 512
    tk = min(_round_up(tk, 128), Ka)
    tn = min(_round_up(tn, 128), Na)
    tm = min(_round_up(tm, sub), Ma)

    in_b = jnp.dtype(cdtype).itemsize
    out_b = jnp.dtype(out_dtype).itemsize

    def footprint(tm_, tn_, tk_):
        # double-buffered x / w / bias / out tiles + f32 accumulator scratch
        return (2 * tm_ * tk_ * in_b + 2 * tk_ * tn_ * in_b
                + 2 * tm_ * tn_ * out_b + tm_ * tn_ * 4 + 2 * tn_ * 4)

    budget = int(0.85 * vmem_limit_bytes)
    while footprint(tm, tn, tk) > budget:
        if tn > 128 and tn >= tk:
            tn = _floor_mult(tn // 2, 128)
        elif tk > 128:
            tk = _floor_mult(tk // 2, 128)
        elif tn > 128:
            tn = _floor_mult(tn // 2, 128)
        elif tm > sub:
            tm = _floor_mult(tm // 2, sub)
        else:
            break

    # v7x megacore: when B == 1, make sure the "parallel" grid axes expose at
    # least 2 tiles so both TensorCores get work.
    if B == 1:
        while _cdiv(M, tm) * _cdiv(Na, tn) < 2:
            if tn > 128:
                tn = _floor_mult(tn // 2, 128)
            elif tm > sub:
                tm = _floor_mult(tm // 2, sub)
            else:
                break

    return tm, tn, tk, Na


# ----------------------------- wrapper ---------------------------------------

def hfta_linear(x, weight, bias=None, *, tm=None, tn=None, tk=None,
                compute_dtype=None, vmem_limit_bytes=48 * 1024 * 1024):
    """Equivalent of hfta.ops.Linear.forward.

    x:      [B, *, in_features]
    weight: [B, in_features, out_features]
    bias:   [B, 1, out_features] or None
    returns [B, *, out_features]

    compute_dtype=jnp.bfloat16 casts x/weight for the matmul (4-8x MXU
    throughput on v5e/v6e/v7x, half the DMA bytes); accumulation and the bias
    add stay f32, output keeps x.dtype.
    """
    B, K, N = weight.shape
    old_shape = list(x.shape)
    assert old_shape[0] == B and old_shape[-1] == K
    out_dtype = x.dtype

    x3 = x.reshape(B, -1, K)
    M = x3.shape[1]

    cdtype = jnp.dtype(compute_dtype) if compute_dtype is not None else jnp.dtype(x.dtype)
    if x3.dtype != cdtype:
        x3 = x3.astype(cdtype)
    w = weight if weight.dtype == cdtype else weight.astype(cdtype)

    tm, tn, tk, Na = _select_tiles(M, K, N, cdtype, out_dtype, tm, tn, tk, B,
                                   vmem_limit_bytes)

    # K MUST be zero-padded to a multiple of tk: garbage in a partial K tile
    # would be accumulated into valid outputs.  Ragged M / N tiles are safe
    # (out-of-range rows/cols are never stored), so no M pad; N is only padded
    # to the 128-lane boundary for lane-dense output stores.
    Kp = _round_up(K, tk)
    if Kp != K:
        x3 = jnp.pad(x3, ((0, 0), (0, 0), (0, Kp - K)))
    if (Kp, Na) != (K, N):
        w = jnp.pad(w, ((0, 0), (0, Kp - K), (0, Na - N)))
    b = bias
    if bias is not None and Na != N:
        b = jnp.pad(bias, ((0, 0), (0, 0), (0, Na - N)))

    mgrid, ngrid, kgrid = _cdiv(M, tm), _cdiv(Na, tn), Kp // tk

    in_b = jnp.dtype(cdtype).itemsize
    out_b = jnp.dtype(out_dtype).itemsize
    bias_bytes = (B * Na * jnp.dtype(bias.dtype).itemsize * mgrid
                  if bias is not None else 0)
    cost = pl.CostEstimate(
        flops=2 * B * M * Kp * Na,
        transcendentals=0,
        bytes_accessed=(B * M * Kp * in_b * ngrid       # x read once per N tile
                        + B * Kp * Na * in_b * mgrid    # w read once per M tile
                        + bias_bytes
                        + B * M * Na * out_b))

    out_shape = jax.ShapeDtypeStruct((B, M, Na), out_dtype)

    if kgrid == 1:
        # ---- single K step: no scratch accumulator, no K grid axis ----
        grid = (B, mgrid, ngrid)
        x_spec = pl.BlockSpec((pl.Squeezed(), tm, tk), lambda bb, i, j: (bb, i, 0))
        w_spec = pl.BlockSpec((pl.Squeezed(), tk, tn), lambda bb, i, j: (bb, 0, j))
        o_spec = pl.BlockSpec((pl.Squeezed(), tm, tn), lambda bb, i, j: (bb, i, j))
        compiler_params = pltpu.CompilerParams(
            dimension_semantics=("parallel", "parallel", "parallel"),
            vmem_limit_bytes=vmem_limit_bytes)
        if bias is not None:
            b_spec = pl.BlockSpec((pl.Squeezed(), 1, tn), lambda bb, i, j: (bb, 0, j))
            res = pl.pallas_call(
                _linear_bias_single_kernel,
                out_shape=out_shape,
                grid_spec=pltpu.PrefetchScalarGridSpec(
                    num_scalar_prefetch=0, grid=grid,
                    in_specs=[x_spec, w_spec, b_spec], out_specs=o_spec),
                compiler_params=compiler_params, cost_estimate=cost,
            )(x3, w, b)
        else:
            res = pl.pallas_call(
                _linear_nobias_single_kernel,
                out_shape=out_shape,
                grid_spec=pltpu.PrefetchScalarGridSpec(
                    num_scalar_prefetch=0, grid=grid,
                    in_specs=[x_spec, w_spec], out_specs=o_spec),
                compiler_params=compiler_params, cost_estimate=cost,
            )(x3, w)
    else:
        # ---- K-innermost reduction with f32 VMEM accumulator ----
        grid = (B, mgrid, ngrid, kgrid)
        x_spec = pl.BlockSpec((pl.Squeezed(), tm, tk), lambda bb, i, j, k: (bb, i, k))
        w_spec = pl.BlockSpec((pl.Squeezed(), tk, tn), lambda bb, i, j, k: (bb, k, j))
        o_spec = pl.BlockSpec((pl.Squeezed(), tm, tn), lambda bb, i, j, k: (bb, i, j))
        compiler_params = pltpu.CompilerParams(
            dimension_semantics=("parallel", "parallel", "parallel", "arbitrary"),
            vmem_limit_bytes=vmem_limit_bytes)
        scratch_shapes = [pltpu.VMEM((tm, tn), jnp.float32)]
        if bias is not None:
            b_spec = pl.BlockSpec((pl.Squeezed(), 1, tn), lambda bb, i, j, k: (bb, 0, j))
            res = pl.pallas_call(
                _linear_bias_kernel,
                out_shape=out_shape,
                grid_spec=pltpu.PrefetchScalarGridSpec(
                    num_scalar_prefetch=0, grid=grid,
                    in_specs=[x_spec, w_spec, b_spec], out_specs=o_spec,
                    scratch_shapes=scratch_shapes),
                compiler_params=compiler_params, cost_estimate=cost,
            )(x3, w, b)
        else:
            res = pl.pallas_call(
                _linear_nobias_kernel,
                out_shape=out_shape,
                grid_spec=pltpu.PrefetchScalarGridSpec(
                    num_scalar_prefetch=0, grid=grid,
                    in_specs=[x_spec, w_spec], out_specs=o_spec,
                    scratch_shapes=scratch_shapes),
                compiler_params=compiler_params, cost_estimate=cost,
            )(x3, w)

    if Na != N:
        res = res[:, :, :N]
    old_shape[-1] = N
    return res.reshape(old_shape)


# ----------------------------- init / reference ------------------------------

def init_params(key, B, in_features, out_features, bias=True, dtype=jnp.float32):
    """Deterministic init mimicking hfta Linear.reset_parameters.

    kaiming_uniform_(a=sqrt(5), mode='fan_out') on weight[b] of shape
    [in_features, out_features]: fan_out = in_features, gain = sqrt(1/3),
    bound = gain * sqrt(3/fan_out).  Bias bound uses fan_out = in_features.
    """
    kw, kb = jax.random.split(key)
    gain = math.sqrt(2.0 / (1.0 + 5.0))
    w_bound = gain * math.sqrt(3.0 / in_features)
    weight = jax.random.uniform(kw, (B, in_features, out_features), dtype=dtype,
                                minval=-w_bound, maxval=w_bound)
    if bias:
        b_bound = 1.0 / math.sqrt(in_features)
        bias_p = jax.random.uniform(kb, (B, 1, out_features), dtype=dtype,
                                    minval=-b_bound, maxval=b_bound)
    else:
        bias_p = None
    return weight, bias_p


def _reference(x, weight, bias):
    B, K, N = weight.shape
    x3 = x.reshape(B, -1, K).astype(jnp.float32)
    ref = jnp.einsum("bmk,bkn->bmn", x3, weight.astype(jnp.float32),
                     precision=jax.lax.Precision.HIGHEST)
    if bias is not None:
        ref = ref + bias.astype(jnp.float32)
    out_shape = list(x.shape)
    out_shape[-1] = N
    return ref.reshape(out_shape)


if __name__ == "__main__":
    key = jax.random.PRNGKey(0)
    k1, k2, k3, k4, k5, k6 = jax.random.split(key, 6)

    # --- Test 1: aligned shapes, small explicit tiles so the grid has multiple
    #     tiles along M, N and K (exercises the multi-K accumulator path with
    #     pl.when first-store/accumulate/finalize and the deferred bias add).
    B, in_f, out_f = 2, 256, 256
    x = jax.random.normal(k1, (B, 4, 16, in_f), dtype=jnp.float32)   # M = 64
    weight, bias = init_params(k2, B, in_f, out_f, bias=True)
    out = jax.block_until_ready(hfta_linear(x, weight, bias, tm=32, tn=128, tk=128))
    ref = _reference(x, weight, bias)
    assert out.shape == (B, 4, 16, out_f)
    assert jnp.allclose(out, ref, atol=1e-4, rtol=1e-5), \
        float(jnp.max(jnp.abs(out - ref)))

    # --- Test 2: unaligned features with default (auto) tiles -> single-K
    #     fast path, lane-padded N, ragged M tiles; with and without bias.
    B2, in_f2, out_f2 = 2, 96, 80
    x2 = jax.random.normal(k3, (B2, 3, 12, in_f2), dtype=jnp.float32)  # M = 36
    weight2, bias2 = init_params(k4, B2, in_f2, out_f2, bias=True)

    out2 = jax.block_until_ready(hfta_linear(x2, weight2, bias2))
    ref2 = _reference(x2, weight2, bias2)
    assert out2.shape == (B2, 3, 12, out_f2)
    assert jnp.allclose(out2, ref2, atol=1e-4, rtol=1e-5), \
        float(jnp.max(jnp.abs(out2 - ref2)))

    out3 = jax.block_until_ready(hfta_linear(x2, weight2, None))
    ref3 = _reference(x2, weight2, None)
    assert jnp.allclose(out3, ref3, atol=1e-4, rtol=1e-5), \
        float(jnp.max(jnp.abs(out3 - ref3)))

    # --- Test 3: B=1, tiny M/N -> megacore guard splits N into >= 2 tiles.
    B3, in_f3, out_f3 = 1, 128, 256
    x3_ = jax.random.normal(k5, (B3, 8, 2, in_f3), dtype=jnp.float32)  # M = 16
    weight3, bias3 = init_params(k6, B3, in_f3, out_f3, bias=True)
    out4 = jax.block_until_ready(hfta_linear(x3_, weight3, bias3))
    ref4 = _reference(x3_, weight3, bias3)
    assert jnp.allclose(out4, ref4, atol=1e-4, rtol=1e-5), \
        float(jnp.max(jnp.abs(out4 - ref4)))

    # --- Test 4: bf16 compute fast path (f32 accumulation, f32 output).
    out5 = jax.block_until_ready(
        hfta_linear(x2, weight2, bias2, compute_dtype=jnp.bfloat16))
    assert out5.dtype == x2.dtype
    assert jnp.allclose(out5, ref2, atol=3e-2, rtol=3e-2), \
        float(jnp.max(jnp.abs(out5 - ref2)))

    print("KERNEL_OK")
</pallas_src>

<mosaic_0001>
module attributes {stable_mosaic.version = 11 : i64} {
  func.func @_linear_bias_kernel(%arg0: i32, %arg1: i32, %arg2: i32, %arg3: i32, %arg4: memref<1x32x128xf32, #tpu.memory_space<vmem>>, %arg5: memref<1x128x128xf32, #tpu.memory_space<vmem>>, %arg6: memref<1x1x128xf32, #tpu.memory_space<vmem>>, %arg7: memref<1x32x128xf32, #tpu.memory_space<vmem>>, %arg8: memref<32x128xf32, #tpu.memory_space<vmem>>) attributes {dimension_semantics = [#tpu.dimension_semantics<parallel>, #tpu.dimension_semantics<parallel>, #tpu.dimension_semantics<parallel>, #tpu.dimension_semantics<arbitrary>], iteration_bounds = array<i64: 2, 2, 2, 2>, scalar_prefetch = 0 : i64, scratch_operands = 1 : i64, tpu.core_type = #tpu.core_type<tc>, window_params = [{transform_indices = @transform_0, window_bounds = array<i64: 1, 32, 128>}, {transform_indices = @transform_1, window_bounds = array<i64: 1, 128, 128>}, {transform_indices = @transform_2, window_bounds = array<i64: 1, 1, 128>}, {transform_indices = @transform_3, window_bounds = array<i64: 1, 32, 128>}]} {
    %c0 = arith.constant 0 : index
    %c0_0 = arith.constant 0 : index
    %c0_1 = arith.constant 0 : index
    %0 = vector.load %arg4[%c0, %c0_0, %c0_1] : memref<1x32x128xf32, #tpu.memory_space<vmem>>, vector<1x32x128xf32>
    %1 = vector.shape_cast %0 : vector<1x32x128xf32> to vector<32x128xf32>
    %c0_2 = arith.constant 0 : index
    %c0_3 = arith.constant 0 : index
    %c0_4 = arith.constant 0 : index
    %2 = vector.load %arg5[%c0_2, %c0_3, %c0_4] : memref<1x128x128xf32, #tpu.memory_space<vmem>>, vector<1x128x128xf32>
    %3 = vector.shape_cast %2 : vector<1x128x128xf32> to vector<128x128xf32>
    %cst = arith.constant dense<0.000000e+00> : vector<32x128xf32>
    %4 = tpu.matmul %1, %3, %cst {dimension_numbers = #tpu.dot_dimension_numbers<[1], [0], [0], [1], [0, 0, 1, 1], [], []>} : vector<32x128xf32>, vector<128x128xf32>, vector<32x128xf32> -> vector<32x128xf32>
    %c0_i32 = arith.constant 0 : i32
    %5 = arith.cmpi eq, %arg3, %c0_i32 : i32
    %6 = arith.extui %5 : i1 to i32
    %c0_i32_5 = arith.constant 0 : i32
    %7 = arith.cmpi ne, %6, %c0_i32_5 : i32
    scf.if %7 {
      %c0_9 = arith.constant 0 : index
      %c0_10 = arith.constant 0 : index
      %14 = vector.load %arg8[%c0_9, %c0_10] : memref<32x128xf32, #tpu.memory_space<vmem>>, vector<32x128xf32>
      tpu.vector_store %arg8[%c0_9, %c0_10], %4 {strides = array<i32>} : memref<32x128xf32, #tpu.memory_space<vmem>>, vector<32x128xf32>,
    } else {
    }
    %c0_i32_6 = arith.constant 0 : i32
    %8 = arith.cmpi sgt, %arg3, %c0_i32_6 : i32
    %9 = arith.extui %8 : i1 to i32
    %c0_i32_7 = arith.constant 0 : i32
    %10 = arith.cmpi ne, %9, %c0_i32_7 : i32
    scf.if %10 {
      %c0_9 = arith.constant 0 : index
      %c0_10 = arith.constant 0 : index
      %14 = vector.load %arg8[%c0_9, %c0_10] : memref<32x128xf32, #tpu.memory_space<vmem>>, vector<32x128xf32>
      %15 = arith.addf %14, %4 : vector<32x128xf32>
      %c0_11 = arith.constant 0 : index
      %c0_12 = arith.constant 0 : index
      %16 = vector.load %arg8[%c0_11, %c0_12] : memref<32x128xf32, #tpu.memory_space<vmem>>, vector<32x128xf32>
      tpu.vector_store %arg8[%c0_11, %c0_12], %15 {strides = array<i32>} : memref<32x128xf32, #tpu.memory_space<vmem>>, vector<32x128xf32>,
    } else {
    }
    %c1_i32 = arith.constant 1 : i32
    %11 = arith.cmpi eq, %arg3, %c1_i32 : i32
    %12 = arith.extui %11 : i1 to i32
    %c0_i32_8 = arith.constant 0 : i32
    %13 = arith.cmpi ne, %12, %c0_i32_8 : i32
    scf.if %13 {
      %c0_9 = arith.constant 0 : index
      %c0_10 = arith.constant 0 : index
      %14 = vector.load %arg8[%c0_9, %c0_10] : memref<32x128xf32, #tpu.memory_space<vmem>>, vector<32x128xf32>
      %c0_11 = arith.constant 0 : index
      %c0_12 = arith.constant 0 : index
      %c0_13 = arith.constant 0 : index
      %15 = vector.load %arg6[%c0_11, %c0_12, %c0_13] : memref<1x1x128xf32, #tpu.memory_space<vmem>>, vector<1x1x128xf32>
      %16 = vector.shape_cast %15 : vector<1x1x128xf32> to vector<1x128xf32>
      %17 = vector.broadcast %16 : vector<1x128xf32> to vector<32x128xf32>
      %18 = arith.addf %14, %17 : vector<32x128xf32>
      %c0_14 = arith.constant 0 : index
      %c0_15 = arith.constant 0 : index
      %c0_16 = arith.constant 0 : index
      %19 = vector.load %arg7[%c0_14, %c0_15, %c0_16] : memref<1x32x128xf32, #tpu.memory_space<vmem>>, vector<1x32x128xf32>
      %20 = vector.shape_cast %19 : vector<1x32x128xf32> to vector<32x128xf32>
      %21 = vector.shape_cast %18 : vector<32x128xf32> to vector<1x32x128xf32>
      tpu.vector_store %arg7[%c0_14, %c0_15, %c0_16], %21 {strides = array<i32>} : memref<1x32x128xf32, #tpu.memory_space<vmem>>, vector<1x32x128xf32>,
    } else {
    }
    return
  }
  func.func @transform_0(%arg0: i32, %arg1: i32, %arg2: i32, %arg3: i32) -> (i32, i32, i32) {
    %c0_i32 = arith.constant 0 : i32
    return %arg0, %arg1, %arg3 : i32, i32, i32
  }
  func.func @transform_1(%arg0: i32, %arg1: i32, %arg2: i32, %arg3: i32) -> (i32, i32, i32) {
    %c0_i32 = arith.constant 0 : i32
    return %arg0, %arg3, %arg2 : i32, i32, i32
  }
  func.func @transform_2(%arg0: i32, %arg1: i32, %arg2: i32, %arg3: i32) -> (i32, i32, i32) {
    %c0_i32 = arith.constant 0 : i32
    %c0_i32_0 = arith.constant 0 : i32
    return %arg0, %c0_i32, %arg2 : i32, i32, i32
  }
  func.func @transform_3(%arg0: i32, %arg1: i32, %arg2: i32, %arg3: i32) -> (i32, i32, i32) {
    %c0_i32 = arith.constant 0 : i32
    return %arg0, %arg1, %arg2 : i32, i32, i32
  }
}

</mosaic_0001>

<bundles_post_ra>
// kernel: tpu_custom_call.1
= control target key start
LH: loop header
LB: loop body
LE: loop exit
PB: predicated region body
PF: predicated region fallthrough
CT: control target
= control target key end

     0   :  { %s1680_s0 = inlined_call_operand.hbm [shape: f32[2,64,256], index: 0, kind: input, shape index: {}]   ;;  %s1681_s1 = inlined_call_operand.hbm [shape: f32[2,256,256], index: 1, kind: input, shape index: {}]   ;;  %s1682_s2 = inlined_call_operand.vmem [shape: f32[2,1,256], index: 2, kind: input, shape index: {}]   ;;  %s1683_s3 = inlined_call_operand.hbm [shape: f32[2,64,256], index: 3, kind: output, shape index: {}]  }
   0x1   :  { %1710 = sst [smem:[#allocation27_spill]] %s1680_s0 }
   0x2   :  { %1711 = sst [smem:[#allocation28_spill]] %s1681_s1 }
   0x3   :  { %1712 = sst [smem:[#allocation29_spill]] %s1682_s2 }
   0x4   :  { %1713 = sst [smem:[#allocation30_spill]] %s1683_s3 }
   0x5   :  { %8 = vsyncpa [#allocation4], 0 }
   0x6   :  { %10 = vsyncpa [#allocation4 + $0x1], 0 }
   0x7   :  { %11 = vsyncpa [#allocation7], 0 }
   0x8   :  { %13 = vsyncpa [#allocation7 + $0x1], 0 }
   0x9   :  { %14 = vsyncpa [#allocation5], 0 }
   0xa   :  { %16 = vsyncpa [#allocation5 + $0x1], 0  ;;  %s1203_s12 = smov 0   ;;  %s1205_s13 = smov 0  }
   0xb   :  { %s1207_s14 = smov 0   ;;  %s1209_s15 = smov 0  }
   0xc   :  { %s1211_s16 = smov 0   ;;  %s1213_s17 = smov 0  }
   0xd   :  { %s1215_s18 = smov 0   ;;  %s1217_s19 = smov 0  }
   0xe   :  { %s1219_s20 = smov 0   ;;  %s1221_s21 = smov 0  }
   0xf   :  { %s1223_s22 = smov 0   ;;  %s1225_s23 = smov 0  }
  0x10   :  { %s1227_s24 = smov 0   ;;  %s1229_s25 = smov 0  }
  0x11   :  { %s1231_s26 = smov 0   ;;  %s1233_s27 = smov 0  }
  0x12   :  { %s1235_s28 = smov 0   ;;  %s1237_s29 = smov 0  }
  0x13 LB: > { %1714 = sst [smem:[#allocation12_spill]] %s1104_s12  ;;  %s622_s30 = sadd.s32 4294967295, %s1172_s29   ;;  %s1172_s29 = sphi %s1237_s29, %s22_s29   ;;  %s1168_s28 = sphi %s1235_s28, %s1797_s28   ;;  %s1164_s27 = sphi %s1233_s27, %s1796_s27   ;;  %s1160_s26 = sphi %s1231_s26, %s1795_s26   ;;  %s1156_s25 = sphi %s1229_s25, %s1780_s25   ;;  %s1152_s24 = sphi %s1227_s24, %s1794_s24   ;;  %s1148_s23 = sphi %s1225_s23, %s1779_s23   ;;  %s1144_s22 = sphi %s1223_s22, %s1793_s22   ;;  %s1140_s21 = sphi %s1221_s21, %s1778_s21   ;;  %s1136_s20 = sphi %s1219_s20, %s1792_s20   ;;  %s1132_s19 = sphi %s1217_s19, %s1791_s19   ;;  %s1128_s18 = sphi %s1215_s18, %s1790_s18   ;;  %s1124_s17 = sphi %s1213_s17, %s1789_s17   ;;  %s1120_s16 = sphi %s1211_s16, %s1788_s16   ;;  %s1116_s15 = sphi %s1209_s15, %s1787_s15   ;;  %s1112_s14 = sphi %s1207_s14, %s1786_s14   ;;  %s1108_s13 = sphi %s1205_s13, %s1785_s13   ;;  %s1104_s12 = sphi %s1203_s12, %s1783_s12  }
  0x14   : > { %1715 = sst [smem:[#allocation13_spill]] %s1132_s19  ;;  %s37_s4 = sadd.s32 1, %s1156_s25 }
  0x15   : > { %1716 = sst [smem:[#allocation14_spill]] %s1140_s21  ;;  %p1293_p0 = scmp.ge.s32.totalorder %s37_s4, 2 }
  0x16   : > { %1717 = sst [smem:[#allocation15_spill]] %s1144_s22  ;;  %p66_p1 = scmp.ne.s32.totalorder %s1136_s20, %s1132_s19 }
  0x17   : > { %1718 = sst [smem:[#allocation16_spill]] %s1148_s23  ;;  %s1799_s4 = smov (%p1293_p0, %s37_s4), 0 }
  0x18   : > { %1719 = sst [smem:[#allocation17_spill]] %s1152_s24  ;;  %p1693_p2 = scmp.eq.s32.totalorder %s1172_s29, 0 }
  0x19   : > { %1720 = sst [smem:[#allocation18_spill]] %s1156_s25  ;;  %s1309_s9 = ssub.s32 %s1156_s25, %s1799_s4 }
  0x1a   : > { %1721 = sst [smem:[#allocation19_spill]] %s1164_s27  ;;  %p72_p3 = scmp.ne.s32.totalorder %s1132_s19, %s1128_s18 }
  0x1b   : > { %1723 = sst [smem:[#allocation20_spill]] %s1799_s4  ;;  %p1314_p4 = por %p1693_p2, %p66_p1 }
  0x1c   : > { %p1318_p5 = scmp.eq.s32.totalorder %s622_s30, 0  ;;  %p1322_p6 = scmp.eq.s32.totalorder %s622_s30, 15 }
  0x1d   : > { %p1692_p8 = scmp.lt.s32.totalorder %s1172_s29, 16  ;;  %s184_s7 = sand.u32 1, %s1136_s20  }
  0x1e   : > { %s1725_s11 = scalar_select %p1318_p5, 1, 0 }
  0x1f   : > { %s1726_s8 = scalar_select %p1322_p6, 1, 0 }
  0x20   : > { %p1328_p7 = por %p1318_p5, %p72_p3  ;;  %s652_s6 = sshll.u32 %s1164_s27, 3 }
  0x21   : > { %s626_s4 = sshll.u32 %s184_s7, 5  ;;  %s194_s3 = sadd.s32 %s1156_s25, %s652_s6 }
  0x22   : > { %s1727_s18 = scalar_select %p1328_p7, 1, 0 }
  0x23   : > { %s629_s23 = sshll.u32 %s1168_s28, 4  ;;  %s188_s21 = scalar_lea.vmem [#allocation3], %s626_s4 }
  0x24   : > { %1728 = sst [smem:[#allocation21_spill]] %s1727_s18  ;;  %s199_s2 = sshll.u32 %s188_s21, 4  ;;  %s1337_s2 = int_to_ptr.vmem [resolvable:$true] %s199_s2 }
  0x25   : > { %s196_s22 = sadd.s32 %s629_s23, %s194_s3  ;;  %p1343_p9 = pnand %p1692_p8, %p1314_p4 }
  0x26   : > { %s630_s30 = sshll.u32 %s196_s22, 7  ;;  %s1730_s0 = sld [smem:[#allocation27_spill]] }
  0x27   : > { %s1353_s3 = scalar_lea.sflag [#allocation4], %s184_s7  ;;  %p932_p12 = pneg %p1343_p9 }
  0x2c   : > { %s1350_s1 = scalar_lea.hbm %s1730_s0, %s630_s30  ;;  %s935_s23 = scalar_lea.hbm %s1730_s0, 4096 }
  0x2d   : > { %s930_s21 = scalar_lea.hbm %s1350_s1, 512  ;;  %p936_p3 = scmp.lt.u32.totalorder %s1350_s1, %s1730_s0 }
  0x2e   : > { %p931_p11 = scmp.ne.s32.totalorder %s1350_s1, %s930_s21  ;;  %p937_p4 = scmp.lt.u32.totalorder %s935_s23, %s930_s21 }
  0x2f   : > { %p939_p2 = scmp.lt.u32.totalorder %s930_s21, %s1350_s1 }
  0x30   : > { %p933_p13 = pnand %p932_p12, %p931_p11  ;;  %p938_p8 = por %p937_p4, %p936_p3 }
  0x32   : > { %p934_p1 = pneg %p933_p13  ;;  %p940_p10 = por %p939_p2, %p938_p8 }
  0x34   : > { %p941_p7 = pnand %p940_p10, %p934_p1 }
  0x36   : > { %944 = shalt.err (!%p941_p7)
}
  0x37   : > { %s945_s7 = scalar_lea.vmem %s1337_s2, 512  ;;  %s1174_s10 = smov [#allocation3]  }
  0x38   : > { %p946_p11 = scmp.ne.s32.totalorder %s1337_s2, %s945_s7  ;;  %s950_s18 = sshll.u32 %s1174_s10, 4  ;;  %s951_s18 = int_to_ptr.vmem [resolvable:$false] %s950_s18 }
  0x39   : > { %s952_s30 = scalar_lea.vmem %s951_s18, 1024  ;;  %p953_p5 = scmp.lt.s32.totalorder %s1337_s2, %s951_s18 }
  0x3a   : > { %p948_p13 = pnand %p946_p11, %p932_p12  ;;  %p954_p3 = scmp.lt.s32.totalorder %s952_s30, %s945_s7 }
  0x3c   : > { %p949_p6 = pneg %p948_p13  ;;  %p955_p4 = por %p954_p3, %p953_p5 }
  0x3e   : > { %p956_p2 = pnand %p955_p4, %p949_p6 }
  0x40   : > { %959 = shalt.err (!%p956_p2)
}
  0x41   : > { %s1696_s21 = smov 256   ;;  %s1697_s19 = smov 128  }
  0x42   : > { %s1698_s22 = smov 8   ;;  %p242_p5 = scmp.lt.s32.totalorder %s1172_s29, 17 }
  0x43   : > { %770 = dma.hbm_to_vmem [thread:$0]  (!%p1343_p9), %s1350_s1, 512, %s1337_s2, %s1353_s3, %s1696_s21, %s1697_s19, %s1698_s22  }
  0x44   : > { %p1731_p6 = scmp.ge.s32.totalorder %s1172_s29, 1  ;;  %s623_s4 = sadd.s32 4294967294, %s1172_s29  }
  0x45   : > { %s40_s6 = sadd.s32 1, %s1160_s26  ;;  %p96_p8 = scmp.ne.s32.totalorder %s1124_s17, %s1120_s16 }
  0x46   : > { %p1387_p7 = pnand %p1731_p6, %p242_p5  ;;  %s1801_s6 = smov (!%p1293_p0, %s40_s6), %s1160_s26 }
  0x47   : > { %p42_p9 = scmp.ge.s32.totalorder %s1801_s6, 2  ;;  %p102_p10 = scmp.ne.s32.totalorder %s1120_s16, %s1116_s15 }
  0x48   : > { %p1733_p12 = scmp.eq.s32.totalorder %s1172_s29, 0  ;;  %s1736_s5 = sadd.s32 1, %s1164_s27 }
  0x49   : > { %s1803_s6 = smov (%p42_p9, %s1801_s6), 0  ;;  %s1805_s5 = smov (!%p42_p9, %s1736_s5), %s1164_s27 }
  0x4a   : > { %p1403_p1 = por %p96_p8, %p1733_p12  ;;  %1735 = sst [smem:[#allocation22_spill]] %s1803_s6 }
  0x4b   : > { %s85_s3 = ssub.s32 %s1160_s26, %s1803_s6  ;;  %p1737_p0 = scmp.ne.s32.totalorder %s1725_s11, 0 }
  0x4c   : > { %p46_p13 = scmp.ge.s32.totalorder %s1805_s5, 2  ;;  %p157_p3 = scmp.ne.s32.totalorder %s1112_s14, %s1108_s13 }
  0x4d   : > { %p1417_p11 = por %p102_p10, %p1737_p0  ;;  %p163_p4 = scmp.ne.s32.totalorder %s1108_s13, %s1104_s12 }
  0x4e   : > { %p164_p2 = scmp.eq.s32.totalorder %s623_s4, 15  ;;  %s1807_s5 = smov (%p46_p13, %s1805_s5), 0 }
  0x4f   : > { %s1738_s7 = scalar_select %p1417_p11, 1, 0 }
  0x50   : > { %1739 = sst [smem:[#allocation23_spill]] %s1807_s5  ;;  %s1740_s15 = sadd.s32 1, %s1168_s28 }
  0x51   : > { %s1809_s15 = smov (!%p46_p13, %s1740_s15), %s1168_s28  ;;  %s53_s10 = ssub.s32 %s1164_s27, %s1807_s5 }
  0x52   : > { %p1741_p5 = scmp.ne.s32.totalorder %s1726_s8, 0  ;;  %p50_p8 = scmp.ge.s32.totalorder %s1809_s15, 2 }
  0x53   : > { %p1438_p9 = por %p164_p2, %p163_p4  ;;  %s209_s30 = sand.u32 1, %s1124_s17  }
  0x54   : > { %p1434_p6 = por %p1741_p5, %p157_p3  ;;  %s653_s4 = sshll.u32 %s1156_s25, 5 }
  0x55   : > { %s1744_s18 = scalar_select %p1438_p9, 1, 0 }
  0x56   : > { %s1742_s11 = scalar_select %p1434_p6, 1, 0 }
  0x57   : > { %1745 = sst [smem:[#allocation25_spill]] %s1744_s18  ;;  %s1811_s15 = smov (%p50_p8, %s1809_s15), 0 }
  0x58   : > { %1743 = sst [smem:[#allocation24_spill]] %s1742_s11  ;;  %s631_s8 = sshll.u32 %s209_s30, 7 }
  0x59   : > { %1746 = sst [smem:[#allocation26_spill]] %s1811_s15  ;;  %s52_s21 = ssub.s32 %s1168_s28, %s1811_s15 }
  0x5a   : > { %s54_s19 = sor.u32 %s53_s10, %s52_s21  ;;  %s84_s22 = sor.u32 %s1309_s9, %s52_s21 }
  0x5b   : > { %s56_s2 = sor.u32 %s1309_s9, %s54_s19  ;;  %s86_s24 = sor.u32 %s85_s3, %s84_s22 }
  0x5c   : > { %p57_p10 = scmp.eq.s32.totalorder %s56_s2, 0  ;;  %p87_p12 = scmp.eq.s32.totalorder %s86_s24, 0 }
  0x5d   : > { %s144_s0 = sor.u32 %s85_s3, %s54_s19  ;;  %s219_s5 = sadd.s32 %s1160_s26, %s653_s4 }
  0x5e   : > { %s1747_s6 = sadd.s32 1, %s1136_s20  ;;  %s1748_s25 = sadd.s32 1, %s1124_s17 }
  0x5f   : > { %s1454_s27 = scalar_select %p57_p10, %s1136_s20, %s1747_s6  }
  0x60   : > { %s1459_s18 = scalar_select %p87_p12, %s1124_s17, %s1748_s25  }
  0x61   : > { %p145_p0 = scmp.eq.s32.totalorder %s144_s0, 0  ;;  %s634_s15 = sshll.u32 %s1168_s28, 6 }
  0x62   : > { %s221_s12 = sadd.s32 %s634_s15, %s219_s5  ;;  %s213_s11 = scalar_lea.vmem [#allocation6], %s631_s8 }
  0x63   : > { %s224_s10 = sshll.u32 %s213_s11, 4  ;;  %s1749_s21 = sadd.s32 1, %s1112_s14  ;;  %s1467_s10 = int_to_ptr.vmem [resolvable:$true] %s224_s10 }
  0x64   : > { %s1465_s9 = scalar_select %p145_p0, %s1112_s14, %s1749_s21  }
  0x65   : > { %s635_s22 = sshll.u32 %s221_s12, 7  ;;  %s1750_s2 = sld [smem:[#allocation28_spill]] }
  0x66   : > { %p1751_p13 = scmp.lt.s32.totalorder %s1172_s29, 16  ;;  %s1482_s12 = scalar_lea.sflag [#allocation7], %s209_s30 }
  0x68   : > { %p1478_p3 = pnand %p1751_p13, %p1403_p1 }
  0x6a   : > { %p962_p2 = pneg %p1478_p3 }
  0x6b   : > { %s1472_s3 = scalar_lea.hbm %s1750_s2, %s635_s22  ;;  %s965_s5 = scalar_lea.hbm %s1750_s2, 16384 }
  0x6c   : > { %s960_s25 = scalar_lea.hbm %s1472_s3, 2048  ;;  %p966_p1 = scmp.lt.u32.totalorder %s1472_s3, %s1750_s2 }
  0x6d   : > { %p961_p4 = scmp.ne.s32.totalorder %s1472_s3, %s960_s25  ;;  %p967_p10 = scmp.lt.u32.totalorder %s965_s5, %s960_s25 }
  0x6e   : > { %p969_p0 = scmp.lt.u32.totalorder %s960_s25, %s1472_s3 }
  0x6f   : > { %p963_p5 = pnand %p962_p2, %p961_p4  ;;  %p968_p12 = por %p967_p10, %p966_p1 }
  0x71   : > { %p964_p8 = pneg %p963_p5  ;;  %p970_p13 = por %p969_p0, %p968_p12 }
  0x73   : > { %p971_p9 = pnand %p970_p13, %p964_p8 }
  0x75   : > { %974 = shalt.err (!%p971_p9)
}
  0x76   : > { %s975_s30 = scalar_lea.vmem %s1467_s10, 2048  ;;  %s1178_s4 = smov [#allocation6]  }
  0x77   : > { %p976_p4 = scmp.ne.s32.totalorder %s1467_s10, %s975_s30  ;;  %s980_s8 = sshll.u32 %s1178_s4, 4  ;;  %s981_s8 = int_to_ptr.vmem [resolvable:$false] %s980_s8 }
  0x78   : > { %s982_s21 = scalar_lea.vmem %s981_s8, 4096  ;;  %p983_p11 = scmp.lt.s32.totalorder %s1467_s10, %s981_s8 }
  0x79   : > { %p978_p5 = pnand %p976_p4, %p962_p2  ;;  %p984_p1 = scmp.lt.s32.totalorder %s982_s21, %s975_s30 }
  0x7b   : > { %p979_p6 = pneg %p978_p5  ;;  %p985_p10 = por %p984_p1, %p983_p11 }
  0x7d   : > { %p986_p12 = pnand %p985_p10, %p979_p6 }
  0x7f   : > { %989 = shalt.err (!%p986_p12)
}
  0x80   : > { %s1753_s22 = smov 8   ;;  %s1754_s24 = smov 128  }
  0x81   : > { %s1755_s19 = smov 256   ;;  %246 = sbr.rel (%p1387_p7) target bundleno = 456 (0x1c8), region = 32 }
  0x82   : > { %773 = dma.hbm_to_vmem [thread:$0]  (!%p1478_p3), %s1472_s3, 2048, %s1467_s10, %s1482_s12, %s1755_s19, %s1754_s24, %s1753_s22  }
  0x83   : > { %s1756_s25 = sld [smem:[#allocation13_spill]] (!%p1387_p7)  ;;  %s1757_s6 = sld [smem:[#allocation21_spill]] (!%p1387_p7) }
  0x89   : > { %s248_s1 = sand.u32 1, %s1756_s25   ;;  %p1758_p11 = scmp.ne.s32.totalorder %s1757_s6, 0 }
  0x8a   : > { %s637_s5 = sshll.u32 %s248_s1, 5  ;;  %s249_s15 = scalar_lea.sflag [#allocation4], %s248_s1 }
  0x8b   : > { %s1516_s11 = scalar_lea.vmem [#allocation3], %s637_s5 }
  0x8c   : > { %1091 = dma.done.wait (%p1758_p11), %s249_s15, 512  }
  0x8d   : > { %1093 = vsyncadd (%p1758_p11), %s249_s15, 4294966784  ;;  %s257_s0 = sand.u32 1, %s1120_s16   ;;  %p1759_p7 = scmp.ne.s32.totalorder %s1738_s7, 0 }
  0x8e   : > { %s638_s30 = sshll.u32 %s257_s0, 7  ;;  %s258_s10 = scalar_lea.sflag [#allocation7], %s257_s0 }
  0x8f   : > { %s1523_s3 = scalar_lea.vmem [#allocation6], %s638_s30 }
  0x90   : > { %1095 = dma.done.wait (%p1759_p7), %s258_s10, 2048  }
  0x91   : > { %1097 = vsyncadd (%p1759_p7), %s258_s10, 4294965248  ;;  %s1760_s23 = sld [smem:[#allocation17_spill]]  ;;  %s1761_s12 = sld [smem:[#allocation15_spill]]  ;;  %v310_v0 = vld [vmem:[%s1523_s3] sm:$0xff]  ;;  %v311_v1 = vld [vmem:[%s1523_s3 + $0x8] sm:$0xff] }
  0x92   : > { %s293_s4 = sand.u32 1, %s1108_s13   ;;  %s1762_s19 = sld [smem:[#allocation29_spill]]  ;;  %v312_v2 = vld [vmem:[%s1523_s3 + $0x10] sm:$0xff]  ;;  %v713_v3 = vpack.c.bf16 %v311_v1, %v310_v0  ;;  %v313_v4 = vld [vmem:[%s1523_s3 + $0x18] sm:$0xff]  ;;  %v314_v6 = vld [vmem:[%s1523_s3 + $0x20] sm:$0xff] }
  0x93   : > { %s1533_s8 = sshll.u32 %s293_s4, 5  ;;  %v717_v5 = vpack.c.bf16 %v313_v4, %v312_v2  ;;  %v315_v7 = vld [vmem:[%s1523_s3 + $0x28] sm:$0xff]  ;;  %v306_v9 = vld [vmem:[%s1516_s11] sm:$0xff]  ;;  %v308_v10 = vld [vmem:[%s1516_s11 + $0x10] sm:$0xff]  ;;  %s1763_s1 = sld [smem:[#allocation14_spill]] }
  0x94   : > { %714 = vmatprep.subr.bf16.mxu0 %v713_v3  ;;  %745 = vmatprep.subr.bf16.mxu1 %v713_v3  ;;  %v721_v8 = vpack.c.bf16 %v315_v7, %v314_v6  ;;  %v316_v11 = vld [vmem:[%s1523_s3 + $0x30] sm:$0xff]  ;;  %v317_v12 = vld [vmem:[%s1523_s3 + $0x38] sm:$0xff]  ;;  %v318_v14 = vld [vmem:[%s1523_s3 + $0x40] sm:$0xff]  ;;  %s1565_s6 = scalar_lea.vmem [#allocation8], %s1533_s8 }
  0x95   : > { %716 = vmatpush3.bf16.msra.mxu0 %v713_v3  ;;  %753 = vmatpush3.bf16.msra.mxu1 %v713_v3  ;;  %v725_v13 = vpack.c.bf16 %v317_v12, %v316_v11  ;;  %v319_v15 = vld [vmem:[%s1523_s3 + $0x48] sm:$0xff]  ;;  %v320_v17 = vld [vmem:[%s1523_s3 + $0x50] sm:$0xff]  ;;  %v321_v18 = vld [vmem:[%s1523_s3 + $0x58] sm:$0xff] }
  0x96   : > { %718 = vmatprep.subr.bf16.mxu0 %v717_v5  ;;  %746 = vmatprep.subr.bf16.mxu1 %v717_v5  ;;  %v729_v16 = vpack.c.bf16 %v319_v15, %v318_v14  ;;  %v733_v19 = vpack.c.bf16 %v321_v18, %v320_v17  ;;  %v322_v20 = vld [vmem:[%s1523_s3 + $0x60] sm:$0xff]  ;;  %v323_v21 = vld [vmem:[%s1523_s3 + $0x68] sm:$0xff]  ;;  %v324_v23 = vld [vmem:[%s1523_s3 + $0x70] sm:$0xff] }
  0x97   : > { %p298_p6 = scmp.lt.s32.totalorder %s1760_s23, 1  ;;  %p300_p9 = scmp.lt.s32.totalorder %s1761_s12, 1  ;;  %707 = vmatprep.mubr.f32.mxu0 %v306_v9  ;;  %710 = vmatprep.mubr.f32.mxu1 %v308_v10  ;;  %v737_v22 = vpack.c.bf16 %v323_v21, %v322_v20  ;;  %v325_v24 = vld [vmem:[%s1523_s3 + $0x78] sm:$0xff]  ;;  %v307_v26 = vld [vmem:[%s1516_s11 + $0x8] sm:$0xff] }
  0x98   : > { %v741_v25 = vpack.c.bf16 %v325_v24, %v324_v23  ;;  %v309_v27 = vld [vmem:[%s1516_s11 + $0x18] sm:$0xff] }
  0x99   : > { %s1813_s23 = smov (!%p298_p6, %s1760_s23), 1  ;;  %s1815_s12 = smov (!%p300_p9, %s1761_s12), 1  ;;  %720 = vmatpush3.bf16.msra.mxu0 %v717_v5  ;;  %754 = vmatpush3.bf16.msra.mxu1 %v717_v5 }
  0x9a   : > { %s640_s7 = sshll.u32 %s1813_s23, 1  ;;  %722 = vmatprep.subr.bf16.mxu0 %v721_v8  ;;  %747 = vmatprep.subr.bf16.mxu1 %v721_v8  ;;  %p641_p3 = scmp.ne.s32.totalorder %s1763_s1, 0 }
  0x9b   : > { %s1538_s21 = sadd.s32 %s640_s7, %s1815_s12 }
  0x9c   : > { %s304_s25 = scalar_lea.vmem %s1762_s19, %s1538_s21 }
  0x9d   : > { %724 = vmatpush3.bf16.msra.mxu0 %v721_v8  ;;  %755 = vmatpush3.bf16.msra.mxu1 %v721_v8 }
  0x9e   : > { %726 = vmatprep.subr.bf16.mxu0 %v725_v13  ;;  %748 = vmatprep.subr.bf16.mxu1 %v725_v13 }
  0xa1   : > { %728 = vmatpush3.bf16.msra.mxu0 %v725_v13  ;;  %756 = vmatpush3.bf16.msra.mxu1 %v725_v13 }
  0xa2   : > { %730 = vmatprep.subr.bf16.mxu0 %v729_v16  ;;  %749 = vmatprep.subr.bf16.mxu1 %v729_v16 }
  0xa5   : > { %732 = vmatpush3.bf16.msra.mxu0 %v729_v16  ;;  %757 = vmatpush3.bf16.msra.mxu1 %v729_v16 }
  0xa6   : > { %734 = vmatprep.subr.bf16.mxu0 %v733_v19  ;;  %750 = vmatprep.subr.bf16.mxu1 %v733_v19 }
  0xa9   : > { %736 = vmatpush3.bf16.msra.mxu0 %v733_v19  ;;  %758 = vmatpush3.bf16.msra.mxu1 %v733_v19 }
  0xaa   : > { %738 = vmatprep.subr.bf16.mxu0 %v737_v22  ;;  %751 = vmatprep.subr.bf16.mxu1 %v737_v22 }
  0xad   : > { %740 = vmatpush3.bf16.msra.mxu0 %v737_v22  ;;  %759 = vmatpush3.bf16.msra.mxu1 %v737_v22 }
  0xae   : > { %742 = vmatprep.subr.bf16.mxu0 %v741_v25  ;;  %752 = vmatprep.subr.bf16.mxu1 %v741_v25 }
  0xb1   : > { %744 = vmatpush3.bf16.msra.mxu0 %v741_v25  ;;  %760 = vmatpush3.bf16.msra.mxu1 %v741_v25 }
  0xb4   : > { %708 = vmatmul.mubr.f32.vlgmr.msra.gmra.mrb[0].mxu0 %v307_v26  ;;  %711 = vmatmul.mubr.f32.vlgmr.msra.gmra.mrb[0].mxu1 %v309_v27 }
 0x182   : > { %414 = sbr.rel (%p641_p3) target bundleno = 394 (0x18a), region = 44 }
 0x187   : > { %v709_v28 = vpop.f32.mrb[0].mxu0  ;;  %v712_v29 = vpop.f32.mrb[0].mxu1 }
 0x188   : > { %v392_v30 = vpop.f32.mrb[1].mxu0  ;;  %v402_v31 = vpop.f32.mrb[1].mxu1  ;;  %416 = vst [vmem:[#allocation2 + $0x8] sm:$0xff] (!%p641_p3), %v709_v28  ;;  %418 = vst [vmem:[#allocation2 + $0x18] sm:$0xff] (!%p641_p3), %v712_v29 }
 0x189   : > { %415 = vst [vmem:[#allocation2] sm:$0xff] %v392_v30  ;;  %417 = vst [vmem:[#allocation2 + $0x10] sm:$0xff] %v402_v31 }
 0x18a PF: > { %s1764_s5 = sld [smem:[#allocation14_spill]] }
 0x190   : > { %p642_p2 = scmp.le.s32.totalorder %s1764_s5, 0 }
 0x191   : > { %v423_v32 = vld [vmem:[#allocation2] sm:$0xff] (!%p642_p2)  ;;  %v424_v33 = vld [vmem:[#allocation2 + $0x8] sm:$0xff] (!%p642_p2)  ;;  %v425_v34 = vld [vmem:[#allocation2 + $0x10] sm:$0xff] (!%p642_p2) }
 0x192   : > { %422 = sbr.rel (%p642_p2) target bundleno = 409 (0x199), region = 48  ;;  %v427_v35 = vadd.f32 (!%p642_p2), %v423_v32, %v392_v30  ;;  %v428_v36 = vadd.f32 (!%p642_p2), %v709_v28, %v424_v33  ;;  %v429_v37 = vadd.f32 (!%p642_p2), %v425_v34, %v402_v31  ;;  %v426_v38 = vld [vmem:[#allocation2 + $0x18] sm:$0xff] (!%p642_p2) }
 0x193   : > { %v430_v39 = vadd.f32 (!%p642_p2), %v712_v29, %v426_v38 }
 0x194   : > { %431 = vst [vmem:[#allocation2] sm:$0xff] (!%p642_p2), %v427_v35  ;;  %432 = vst [vmem:[#allocation2 + $0x8] sm:$0xff] (!%p642_p2), %v428_v36 }
 0x195   : > { %433 = vst [vmem:[#allocation2 + $0x10] sm:$0xff] (!%p642_p2), %v429_v37  ;;  %434 = vst [vmem:[#allocation2 + $0x18] sm:$0xff] (!%p642_p2), %v430_v39 }
 0x199 PF: > { %s1765_s15 = sld [smem:[#allocation14_spill]] }
 0x19f   : > { %p643_p8 = scmp.ne.s32.totalorder %s1765_s15, 1 }
 0x1a0   : > { %v439_v40 = vld [vmem:[#allocation2] sm:$0xff] (!%p643_p8)  ;;  %v440_v42 = vld [vmem:[#allocation2 + $0x8] sm:$0xff] (!%p643_p8)  ;;  %v441_v45 = vld [vmem:[#allocation2 + $0x10] sm:$0xff] (!%p643_p8) }
 0x1a1   : > { %438 = sbr.rel (%p643_p8) target bundleno = 424 (0x1a8), region = 52  ;;  %v644_v41 = vld [vmem:[%s304_s25] ss:$0 sm:$0xff] (!%p643_p8)  ;;  %v442_v46 = vld [vmem:[#allocation2 + $0x18] sm:$0xff] (!%p643_p8) }
 0x1a2   : > { %v450_v43 = vadd.f32 (!%p643_p8), %v644_v41, %v439_v40  ;;  %v451_v44 = vadd.f32 (!%p643_p8), %v644_v41, %v440_v42  ;;  %v452_v47 = vadd.f32 (!%p643_p8), %v644_v41, %v441_v45  ;;  %v453_v48 = vadd.f32 (!%p643_p8), %v644_v41, %v442_v46 }
 0x1a4   : > { %454 = vst [vmem:[%s1565_s6] sm:$0xff] (!%p643_p8), %v450_v43  ;;  %455 = vst [vmem:[%s1565_s6 + $0x8] sm:$0xff] (!%p643_p8), %v451_v44 }
 0x1a5   : > { %456 = vst [vmem:[%s1565_s6 + $0x10] sm:$0xff] (!%p643_p8), %v452_v47  ;;  %457 = vst [vmem:[%s1565_s6 + $0x18] sm:$0xff] (!%p643_p8), %v453_v48 }
 0x1a8 PF: > { %s1767_s10 = sld [smem:[#allocation16_spill]]  ;;  %s1768_s3 = sld [smem:[#allocation15_spill]] }
 0x1a9   : > { %s1769_s23 = sld [smem:[#allocation17_spill]]  ;;  %s1770_s12 = sld [smem:[#allocation24_spill]] }
 0x1aa   : > { %s476_s24 = sshll.u32 %s1565_s6, 4  ;;  %s1771_s5 = sld [smem:[#allocation30_spill]]  ;;  %s1583_s24 = int_to_ptr.vmem [resolvable:$true] %s476_s24 }
 0x1ab   : > { %s1592_s11 = scalar_lea.sflag [#allocation5], %s293_s4  ;;  %s990_s0 = scalar_lea.vmem %s1583_s24, 512 }
 0x1ac   : > { %p991_p0 = scmp.ne.s32.totalorder %s1583_s24, %s990_s0  ;;  %s1179_s6 = smov [#allocation8]  }
 0x1ad   : > { %s994_s30 = sshll.u32 %s1179_s6, 4  ;;  %s995_s30 = int_to_ptr.vmem [resolvable:$false] %s994_s30 }
 0x1ae   : > { %s654_s8 = sshll.u32 %s1767_s10, 3  ;;  %s996_s10 = scalar_lea.vmem %s995_s30, 1024 }
 0x1af   : > { %s471_s7 = sadd.s32 %s1768_s3, %s654_s8  ;;  %s648_s21 = sshll.u32 %s1769_s23, 4 }
 0x1b0   : > { %s473_s22 = sadd.s32 %s648_s21, %s471_s7  ;;  %p1772_p13 = scmp.ne.s32.totalorder %s1770_s12, 0 }
 0x1b1   : > { %s649_s19 = sshll.u32 %s473_s22, 7  ;;  %p997_p1 = scmp.lt.s32.totalorder %s1583_s24, %s995_s30 }
 0x1b2   : > { %s1588_s15 = scalar_lea.hbm %s1771_s5, %s649_s19  ;;  %p992_p4 = pnand %p991_p0, %p1772_p13 }
 0x1b3   : > { %p998_p10 = scmp.lt.s32.totalorder %s996_s10, %s990_s0 }
 0x1b4   : > { %p993_p5 = pneg %p992_p4 }
 0x1b5   : > { %p999_p12 = por %p998_p10, %p997_p1 }
 0x1b7   : > { %p1000_p11 = pnand %p999_p12, %p993_p5 }
 0x1b9   : > { %1003 = shalt.err (!%p1000_p11)
}
 0x1ba   : > { %s1004_s4 = scalar_lea.hbm %s1588_s15, 512  ;;  %s1008_s8 = scalar_lea.hbm %s1771_s5, 4096 }
 0x1bb   : > { %p1005_p7 = scmp.ne.s32.totalorder %s1588_s15, %s1004_s4  ;;  %p1009_p3 = scmp.lt.u32.totalorder %s1588_s15, %s1771_s5 }
 0x1bc   : > { %p1010_p2 = scmp.lt.u32.totalorder %s1008_s8, %s1004_s4  ;;  %p1012_p0 = scmp.lt.u32.totalorder %s1004_s4, %s1588_s15 }
 0x1bd   : > { %p1006_p6 = pnand %p1005_p7, %p1772_p13 }
 0x1be   : > { %p1011_p8 = por %p1010_p2, %p1009_p3 }
 0x1bf   : > { %p1007_p9 = pneg %p1006_p6 }
 0x1c0   : > { %p1013_p4 = por %p1012_p0, %p1011_p8 }
 0x1c2   : > { %p1014_p5 = pnand %p1013_p4, %p1007_p9 }
 0x1c4   : > { %1017 = shalt.err (!%p1014_p5)
}
 0x1c5   : > { %s1180_s22 = smov 128   ;;  %s1181_s19 = smov 256  }
 0x1c6   : > { %s1182_s25 = smov 8  }
 0x1c7   : > { %765 = dma.vmem_to_hbm [thread:$0]  (%p1772_p13), %s1583_s24, 512, %s1588_s15, %s1592_s11, %s1180_s22, %s1181_s19, %s1182_s25  }
 0x1c8 PF: > { %s1773_s1 = sld [smem:[#allocation12_spill]]  ;;  %s1774_s0 = sld [smem:[#allocation25_spill]] }
 0x1c9   : > { %p779_p1 = scmp.ge.s32.totalorder %s1172_s29, 2 }
 0x1ce   : > { %s491_s6 = sand.u32 1, %s1773_s1   ;;  %p1775_p10 = scmp.ne.s32.totalorder %s1774_s0, 0 }
 0x1cf   : > { %s492_s30 = scalar_lea.sflag [#allocation5], %s491_s6 }
 0x1d0   : > { %p775_p12 = pnand %p779_p1, %p1775_p10 }
 0x1d2   : > { %1099 = dma.done.wait (!%p775_p12), %s492_s30, 512  }
 0x1d3   : > { %1101 = vsyncadd (!%p775_p12), %s492_s30, 4294966784  ;;  %s22_s29 = sadd.s32 1, %s1172_s29   ;;  %s1777_s24 = sld [smem:[#allocation13_spill]] }
 0x1d4   : > { %p1621_p11 = scmp.ge.s32.totalorder %s22_s29, 18   ;;  %s1778_s21 = sld [smem:[#allocation18_spill]] }
 0x1d5   : > { %s1779_s23 = sld [smem:[#allocation19_spill]]  ;;  %s1780_s25 = sld [smem:[#allocation20_spill]] }
 0x1d6   : > { %s1781_s11 = sld [smem:[#allocation22_spill]]  ;;  %s1782_s4 = sld [smem:[#allocation23_spill]] }
 0x1d7   : > { %s1783_s12 = smov %s1108_s13  ;;  %s1784_s3 = sld [smem:[#allocation26_spill]] }
 0x1d8   : > { %s1785_s13 = smov %s1112_s14  ;;  %s1786_s14 = smov %s1465_s9 }
 0x1d9   : > { %s1787_s15 = smov %s1120_s16  ;;  %s1788_s16 = smov %s1124_s17 }
 0x1da   : > { %s1789_s17 = smov %s1459_s18  ;;  %s1790_s18 = smov %s1777_s24 }
 0x1db   : > { %s1791_s19 = smov %s1136_s20  ;;  %s1792_s20 = smov %s1454_s27 }
 0x1dc   : > { %s1793_s22 = smov %s1160_s26  ;;  %s1794_s24 = smov %s1168_s28 }
 0x1dd   : > { %s1795_s26 = smov %s1781_s11  ;;  %s1796_s27 = smov %s1782_s4 }
 0x1de   : > { %s1797_s28 = smov %s1784_s3  ;;  %21 = sbr.rel (!%p1621_p11) target bundleno = 19 (0x13), region = 105 }
 0x1e5   :  { %497 = vsyncpa [#allocation4], 1 }
 0x1e6   :  { %499 = vsyncpa [#allocation4 + $0x1], 1 }
 0x1e7   :  { %500 = vsyncpa [#allocation7], 1 }
 0x1e8   :  { %502 = vsyncpa [#allocation7 + $0x1], 1 }
 0x1e9   :  { %503 = vsyncpa [#allocation5], 1 }
 0x1ea   :  { %505 = vsyncpa [#allocation5 + $0x1], 1 }

</bundles_post_ra>
